<compile_context>
chip_gen: v5e
topology: v5e:2x2
jax: 0.10.0
libtpu: 0.0.40
codegen_flags: <defaults>
</compile_context>

<pallas_src>
import numpy as np
import jax
import jax.numpy as jnp
from jax.experimental import pallas as pl
from jax.experimental.pallas import tpu as pltpu


# ----------------------------------------------------------------------------
# Parameter construction (mirrors Analysis.__init__ + normalize())
# ----------------------------------------------------------------------------
def make_frame(num_channels: int, frame_size: int, norm_ratio: float,
               parseval: bool, key) -> jnp.ndarray:
    """Deterministically build the (frame_size, C, 1, 1) frame and normalize it."""
    # nn.Conv2d default init (kaiming uniform) replaced by a deterministic
    # uniform init of the same shape; forward() semantics don't depend on it.
    fan_in = num_channels  # 1x1 kernel
    bound = 1.0 / np.sqrt(fan_in)
    frame = jax.random.uniform(key, (frame_size, num_channels, 1, 1),
                               dtype=jnp.float32, minval=-bound, maxval=bound)

    if parseval:
        # nn.init.orthogonal_ on the flattened (frame_size, C) matrix.
        flat = frame.reshape(frame_size, num_channels)
        q, r = jnp.linalg.qr(flat.T if frame_size > num_channels else flat)
        d = jnp.sign(jnp.diag(r))
        q = q * d[None, :]
        flat = q.T if frame_size > num_channels else q
        frame = flat.reshape(frame_size, num_channels, 1, 1)

    mean_norm = np.sqrt(min(num_channels, frame_size) / frame_size)

    # normalize() from the reference module
    if norm_ratio > 1:
        norms = jnp.sqrt(jnp.sum(frame ** 2, axis=(1, 2, 3), keepdims=True))
        lower = mean_norm / np.sqrt(norm_ratio)
        upper = mean_norm * np.sqrt(norm_ratio)
        frame = jnp.where(norms < lower, frame / (norms / lower), frame)
        frame = jnp.where(norms > upper, frame / (norms / upper), frame)
    elif norm_ratio == 1:
        norms = jnp.sqrt(jnp.sum(frame ** 2, axis=(1, 2, 3), keepdims=True))
        frame = frame / (norms / mean_norm)
    return frame


# ----------------------------------------------------------------------------
# Pallas kernel (lane-dense):  o_tile = F^T @ relu(F @ x_tile)
# ----------------------------------------------------------------------------
def analysis_kernel(x_ref, f_ref, ft_ref, o_ref):
    x = x_ref[0]                                    # (C, T)  spatial on lanes
    f = f_ref[...]                                  # (K, C)  resident
    ft = ft_ref[...]                                # (C, K)  resident (pre-transposed)
    # F x  (1x1 conv2d)  -> (K, T)
    y = jnp.dot(f, x, preferred_element_type=jnp.float32)
    # rho  (non-linearity, fixed to ReLU)
    y = jnp.maximum(y, 0.0)
    # F^T rho(F x)  (1x1 conv_transpose2d) -> (C, T)
    o_ref[0] = jnp.dot(ft, y, preferred_element_type=jnp.float32).astype(o_ref.dtype)


def analysis_forward(x_nchw: jnp.ndarray, frame: jnp.ndarray,
                     tile_m: int = 32768) -> jnp.ndarray:
    """x_nchw: (N, C, H, W) float32; frame: (K, C, 1, 1). Returns (N, C, H, W)."""
    N, C, H, W = x_nchw.shape
    K = frame.shape[0]
    f2d = frame.reshape(K, C)
    ft2d = jnp.transpose(f2d)          # one-time tiny (C, K) transpose, outside kernel

    # NCHW already has H*W contiguous last -> free reshape, no transpose needed.
    HW = H * W
    x_flat = x_nchw.reshape(N, C, HW)

    # Spatial (lane) tile: multiple of 128, capped by the (padded) spatial size.
    hw_128 = pl.cdiv(HW, 128) * 128
    tm = max(128, (min(tile_m, hw_128) // 128) * 128)
    HW_pad = pl.cdiv(HW, tm) * tm
    if HW_pad != HW:
        # zero padding is harmless: F^T relu(F 0) = 0, trimmed afterwards
        x_flat = jnp.pad(x_flat, ((0, 0), (0, 0), (0, HW_pad - HW)))

    grid = (N, HW_pad // tm)

    out_flat = pl.pallas_call(
        analysis_kernel,
        out_shape=jax.ShapeDtypeStruct((N, C, HW_pad), x_nchw.dtype),
        grid_spec=pltpu.PrefetchScalarGridSpec(
            num_scalar_prefetch=0,
            grid=grid,
            in_specs=[
                pl.BlockSpec((1, C, tm), lambda n, j: (n, 0, j)),   # x tile (lane-dense)
                pl.BlockSpec((K, C), lambda n, j: (0, 0)),          # frame, resident
                pl.BlockSpec((C, K), lambda n, j: (0, 0)),          # frame^T, resident
            ],
            out_specs=pl.BlockSpec((1, C, tm), lambda n, j: (n, 0, j)),
        ),
        compiler_params=pltpu.CompilerParams(
            dimension_semantics=("parallel", "parallel")),
    )(x_flat, f2d, ft2d)

    if HW_pad != HW:
        out_flat = out_flat[:, :, :HW]
    return out_flat.reshape(N, C, H, W)


# ----------------------------------------------------------------------------
# Pure-JAX reference for a sanity check
# ----------------------------------------------------------------------------
def analysis_ref(x_nchw, frame):
    K, C = frame.shape[0], frame.shape[1]
    f2d = frame.reshape(K, C)
    y = jnp.einsum('nchw,kc->nkhw', x_nchw, f2d)
    y = jnp.maximum(y, 0.0)
    return jnp.einsum('nkhw,kc->nchw', y, f2d)


if __name__ == "__main__":
    key = jax.random.PRNGKey(0)
    kx, kf = jax.random.split(key)

    # Small shapes consistent with the module: batch=2, channels=4, spatial=16
    N, C, H, W = 2, 4, 16, 16
    frame_size = 8
    norm_ratio = 1.0          # normalize all atoms to mean_norm
    parseval = False

    x = jax.random.normal(kx, (N, C, H, W), dtype=jnp.float32)
    frame = make_frame(C, frame_size, norm_ratio, parseval, kf)

    out = analysis_forward(x, frame)
    out = jax.block_until_ready(out)

    ref = analysis_ref(x, frame)
    np.testing.assert_allclose(np.asarray(out), np.asarray(ref),
                               rtol=1e-5, atol=1e-5)

    print("KERNEL_OK")
</pallas_src>

<mosaic_0001>
module attributes {stable_mosaic.version = 11 : i64} {
  func.func @analysis_kernel(%arg0: i32, %arg1: i32, %arg2: memref<1x4x256xf32, #tpu.memory_space<vmem>>, %arg3: memref<8x4xf32, #tpu.memory_space<vmem>>, %arg4: memref<4x8xf32, #tpu.memory_space<vmem>>, %arg5: memref<1x4x256xf32, #tpu.memory_space<vmem>>) attributes {dimension_semantics = [#tpu.dimension_semantics<parallel>, #tpu.dimension_semantics<parallel>], iteration_bounds = array<i64: 2, 1>, scalar_prefetch = 0 : i64, scratch_operands = 0 : i64, tpu.core_type = #tpu.core_type<tc>, window_params = [{transform_indices = @transform_0, window_bounds = array<i64: 1, 4, 256>}, {pipeline_mode = #tpu.pipeline_mode<synchronous>, transform_indices = @transform_1, window_bounds = array<i64: 8, 4>}, {pipeline_mode = #tpu.pipeline_mode<synchronous>, transform_indices = @transform_2, window_bounds = array<i64: 4, 8>}, {transform_indices = @transform_3, window_bounds = array<i64: 1, 4, 256>}]} {
    %c0 = arith.constant 0 : index
    %c0_0 = arith.constant 0 : index
    %c0_1 = arith.constant 0 : index
    %0 = vector.load %arg2[%c0, %c0_0, %c0_1] : memref<1x4x256xf32, #tpu.memory_space<vmem>>, vector<1x4x256xf32>
    %1 = vector.shape_cast %0 : vector<1x4x256xf32> to vector<4x256xf32>
    %c0_2 = arith.constant 0 : index
    %c0_3 = arith.constant 0 : index
    %2 = vector.load %arg3[%c0_2, %c0_3] : memref<8x4xf32, #tpu.memory_space<vmem>>, vector<8x4xf32>
    %c0_4 = arith.constant 0 : index
    %c0_5 = arith.constant 0 : index
    %3 = vector.load %arg4[%c0_4, %c0_5] : memref<4x8xf32, #tpu.memory_space<vmem>>, vector<4x8xf32>
    %cst = arith.constant dense<0.000000e+00> : vector<8x256xf32>
    %4 = tpu.matmul %2, %1, %cst {dimension_numbers = #tpu.dot_dimension_numbers<[1], [0], [0], [1], [0, 0, 1, 1], [], []>} : vector<8x4xf32>, vector<4x256xf32>, vector<8x256xf32> -> vector<8x256xf32>
    %cst_6 = arith.constant 0.000000e+00 : f32
    %5 = vector.broadcast %cst_6 : f32 to vector<8x256xf32>
    %6 = arith.maximumf %4, %5 : vector<8x256xf32>
    %cst_7 = arith.constant dense<0.000000e+00> : vector<4x256xf32>
    %7 = tpu.matmul %3, %6, %cst_7 {dimension_numbers = #tpu.dot_dimension_numbers<[1], [0], [0], [1], [0, 0, 1, 1], [], []>} : vector<4x8xf32>, vector<8x256xf32>, vector<4x256xf32> -> vector<4x256xf32>
    %c0_8 = arith.constant 0 : index
    %c0_9 = arith.constant 0 : index
    %c0_10 = arith.constant 0 : index
    %8 = vector.load %arg5[%c0_8, %c0_9, %c0_10] : memref<1x4x256xf32, #tpu.memory_space<vmem>>, vector<1x4x256xf32>
    %9 = vector.shape_cast %8 : vector<1x4x256xf32> to vector<4x256xf32>
    %10 = vector.shape_cast %7 : vector<4x256xf32> to vector<1x4x256xf32>
    tpu.vector_store %arg5[%c0_8, %c0_9, %c0_10], %10 {strides = array<i32>} : memref<1x4x256xf32, #tpu.memory_space<vmem>>, vector<1x4x256xf32>,
    return
  }
  func.func @transform_0(%arg0: i32, %arg1: i32) -> (i32, i32, i32) {
    %c0_i32 = arith.constant 0 : i32
    %c0_i32_0 = arith.constant 0 : i32
    return %arg0, %c0_i32, %arg1 : i32, i32, i32
  }
  func.func @transform_1(%arg0: i32, %arg1: i32) -> (i32, i32) {
    %c0_i32 = arith.constant 0 : i32
    %c0_i32_0 = arith.constant 0 : i32
    %c0_i32_1 = arith.constant 0 : i32
    return %c0_i32, %c0_i32_0 : i32, i32
  }
  func.func @transform_2(%arg0: i32, %arg1: i32) -> (i32, i32) {
    %c0_i32 = arith.constant 0 : i32
    %c0_i32_0 = arith.constant 0 : i32
    %c0_i32_1 = arith.constant 0 : i32
    return %c0_i32, %c0_i32_0 : i32, i32
  }
  func.func @transform_3(%arg0: i32, %arg1: i32) -> (i32, i32, i32) {
    %c0_i32 = arith.constant 0 : i32
    %c0_i32_0 = arith.constant 0 : i32
    return %arg0, %c0_i32, %arg1 : i32, i32, i32
  }
}

</mosaic_0001>

<bundles_post_ra>
// kernel: tpu_custom_call.1
= control target key start
LH: loop header
LB: loop body
LE: loop exit
PB: predicated region body
PF: predicated region fallthrough
CT: control target
= control target key end

     0   :  { %8 = vsyncpa [#allocation3], 0  ;;  %s768_s0 = inlined_call_operand.hbm [shape: f32[2,4,256], index: 0, kind: input, shape index: {}]   ;;  %s769_s1 = inlined_call_operand.vmem [shape: f32[8,4], index: 1, kind: input, shape index: {}]   ;;  %s770_s2 = inlined_call_operand.vmem [shape: f32[4,8], index: 2, kind: input, shape index: {}]   ;;  %s771_s3 = inlined_call_operand.hbm [shape: f32[2,4,256], index: 3, kind: output, shape index: {}]  }
   0x1   :  { %10 = vsyncpa [#allocation3 + $0x1], 0 }
   0x2   :  { %11 = vsyncpa [#allocation4], 0 }
   0x3   :  { %13 = vsyncpa [#allocation4 + $0x1], 0  ;;  %s639_s12 = smov 0   ;;  %s641_s13 = smov 0  }
   0x4   :  { %s643_s14 = smov 0   ;;  %s645_s15 = smov 0  }
   0x5   :  { %s647_s16 = smov 0   ;;  %s649_s17 = smov 0  }
   0x6 LB: > { %s420_s18 = sadd.s32 4294967295, %s617_s17   ;;  %s421_s19 = sadd.s32 4294967294, %s617_s17   ;;  %s617_s17 = sphi %s649_s17, %s19_s17   ;;  %s613_s16 = sphi %s647_s16, %s780_s16   ;;  %s609_s15 = sphi %s645_s15, %s779_s15   ;;  %s605_s14 = sphi %s643_s14, %s778_s14   ;;  %s601_s13 = sphi %s641_s13, %s777_s13   ;;  %s597_s12 = sphi %s639_s12, %s776_s12  }
   0x7   : > { %s31_s20 = sadd.s32 1, %s613_s16  ;;  %s40_s21 = sadd.s32 1, %s605_s14 }
   0x8   : > { %p33_p0 = scmp.ge.s32.totalorder %s31_s20, 2  ;;  %p47_p1 = scmp.ne.s32.totalorder %s605_s14, %s601_s13 }
   0x9   : > { %p48_p2 = scmp.eq.s32.totalorder %s617_s17, 0  ;;  %p53_p3 = scmp.ne.s32.totalorder %s601_s13, %s597_s12 }
   0xa   : > { %s782_s20 = smov (%p33_p0, %s31_s20), 0  ;;  %p54_p5 = scmp.eq.s32.totalorder %s420_s18, 0 }
   0xb   : > { %p680_p4 = por %p48_p2, %p47_p1  ;;  %s35_s23 = ssub.s32 %s613_s16, %s782_s20 }
   0xc   : > { %p121_p6 = scmp.eq.s32.totalorder %s420_s18, 1  ;;  %p38_p7 = scmp.eq.s32.totalorder %s35_s23, 0 }
   0xd   : > { %p686_p8 = por %p54_p5, %p53_p3  ;;  %p127_p10 = scmp.eq.s32.totalorder %s421_s19, 1 }
   0xe   : > { %p690_p9 = por %p121_p6, %p47_p1  ;;  %p423_p12 = scmp.ge.s32.totalorder %s617_s17, 2 }
   0xf   : > { %s695_s26 = scalar_select %p38_p7, %s605_s14, %s40_s21  }
  0x10   : > { %p697_p11 = por %p127_p10, %p53_p3  ;;  %p455_p13 = scmp.lt.s32.totalorder %s617_s17, 2 }
  0x11   : > { %s153_s28 = sand.u32 1, %s605_s14   ;;  %s441_s30 = sshll.u32 %s613_s16, 3 }
  0x12   : > { %s424_s29 = sshll.u32 %s153_s28, 3  ;;  %s164_s6 = scalar_lea.hbm %s768_s0, %s441_s30 }
  0x13   : > { %s157_s7 = scalar_lea.vmem [#allocation2], %s424_s29  ;;  %s166_s9 = sshll.u32 %s164_s6, 4  ;;  %s167_s9 = int_to_ptr.hbm [resolvable:$true] %s166_s9 }
  0x14   : > { %s168_s8 = sshll.u32 %s157_s7, 4  ;;  %p448_p0 = pnand %p455_p13, %p680_p4  ;;  %s169_s8 = int_to_ptr.vmem [resolvable:$true] %s168_s8 }
  0x15   : > { %p427_p1 = scmp.ge.s32.totalorder %s617_s17, 1  ;;  %p173_p2 = scmp.lt.s32.totalorder %s617_s17, 3 }
  0x16   : > { %s154_s10 = scalar_lea.sflag [#allocation3], %s153_s28 }
  0x17   : > { %450 = dma.hbm_to_vmem [thread:$0]  (!%p448_p0), %s167_s9, 128, %s169_s8, %s154_s10  }
  0x18   : > { %p174_p3 = pnand %p427_p1, %p173_p2 }
  0x19   : > { %s713_s11 = sand.u32 (!%p174_p3), 1, %s601_s13  }
  0x1a   : > { %177 = sbr.rel (%p174_p3) target bundleno = 309 (0x135), region = 32  ;;  %s428_s18 = sshll.u32 (!%p174_p3), %s713_s11, 3 }
  0x1b   : > { %s180_s19 = scalar_lea.sflag (!%p174_p3), [#allocation3], %s713_s11  ;;  %s183_s21 = scalar_lea.vmem (!%p174_p3), [#allocation2], %s428_s18 }
  0x1f   : > { %588 = dma.done.wait (%p686_p8), %s180_s19, 128  }
  0x20   : > { %590 = vsyncadd (%p686_p8), %s180_s19, 4294967168  ;;  %v209_v0 = vld [vmem:[%s183_s21] sm:$0xff]  ;;  %vm220_vm0 = vcmask 1043456   ;;  %v210_v1 = vld [vmem:[%s769_s1] sm:$0xff]  ;;  %vm216_vm1 = vcmask 31744   ;;  %vm267_vm2 = vcmask 64512  }
  0x21   : > { %213 = vst [vmem:[#allocation1] ss:$2 sm:$0xff] %v209_v0  ;;  %v211_v8 = vld [vmem:[%s770_s2] sm:$0xf]  ;;  %s442_s29 = sshll.u32 %s609_s15, 3  ;;  %s206_s6 = scalar_lea.vmem [#allocation5], %s428_s18 }
  0x22   : > { %s331_s5 = scalar_lea.hbm %s771_s3, %s442_s29  ;;  %s333_s7 = sshll.u32 %s206_s6, 4  ;;  %s334_s7 = int_to_ptr.vmem [resolvable:$true] %s333_s7 }
  0x23   : > { %s335_s8 = sshll.u32 %s331_s5, 4  ;;  %s318_s9 = scalar_lea.sflag [#allocation4], %s713_s11  ;;  %s336_s8 = int_to_ptr.hbm [resolvable:$true] %s335_s8 }
  0x24   : > { %s549_s10 = sshra.s32 %s336_s8, 4  ;;  %s555_s21 = scalar_lea.hbm %s771_s3, 16  ;;  %s550_s10 = int_to_ptr.hbm [resolvable:$true] %s549_s10 }
  0x25   : > { %s551_s15 = scalar_lea.hbm %s550_s10, 8  ;;  %p556_p7 = scmp.lt.s32.totalorder %s550_s10, %s771_s3 }
  0x26   : > { %p552_p4 = scmp.ne.s32.totalorder %s550_s10, %s551_s15  ;;  %p557_p8 = scmp.lt.s32.totalorder %s555_s21, %s551_s15 }
  0x28   : > { %v215_v2 = vld.sshfl [vmem:[#allocation1 + $0x8] sm:$0xff pattern:$0x75316420]  ;;  %v214_v3 = vld.sshfl [vmem:[#allocation1] sm:$0xff pattern:$0x75316420]  ;;  %p553_p5 = pnand %p552_p4, %p690_p9  ;;  %p558_p10 = por %p557_p8, %p556_p7 }
  0x29   : > { %432 = vmatpush.msk.msra.mxu1 %vm220_vm0, %v215_v2  ;;  %430 = vmatpush.msk.msra.mxu0 %vm220_vm0, %v214_v3 }
  0x2a   : > { %433 = vmatmul.msk.f32.vlgmr.msra.gmra.mxu1 %vm216_vm1, %v210_v1  ;;  %431 = vmatmul.msk.f32.vlgmr.msra.gmra.mxu0 %vm216_vm1, %v210_v1  ;;  %p554_p6 = pneg %p553_p5 }
  0x2c   : > { %p559_p13 = pnand %p558_p10, %p554_p6 }
  0xa7   : > { %v262_v4 = vpop.f32.mrf.mxu1  ;;  %v242_v5 = vpop.f32.mrf.mxu0 }
  0xa8   : > { %v266_v6 = vmax.f32 %v262_v4, 0.0  ;;  %v265_v7 = vmax.f32 %v242_v5, 0.0 }
  0xaa   : > { %306 = vmatpush.msra.mxu3 %v266_v6  ;;  %286 = vmatpush.msra.mxu2 %v265_v7 }
  0xab   : > { %435 = vmatmul.msk.f32.vlgmr.msra.gmra.mxu3 %vm267_vm2, %v211_v8  ;;  %434 = vmatmul.msk.f32.vlgmr.msra.gmra.mxu2 %vm267_vm2, %v211_v8 }
 0x12e   : > { %v308_v9 = vpop.f32.mrf.mxu3  ;;  %v288_v10 = vpop.f32.mrf.mxu2 }
 0x12f   : > { %v313_v11 = vrot.slane %v308_v9, 4 }
 0x131   : > { %v314_v12 = vsel %vm220_vm0, %v288_v10, %v313_v11 }
 0x132   : > { %316 = vst [vmem:[%s206_s6] sm:$0xff] %v314_v12 }
 0x133   : > { %562 = shalt.err (!%p559_p13)
}
 0x134   : > { %445 = dma.vmem_to_hbm [thread:$0]  (%p690_p9), %s334_s7, 128, %s336_s8, %s318_s9  }
 0x135 PF: > { %s347_s11 = sand.u32 1, %s597_s12   ;;  %p452_p0 = pnand %p423_p12, %p697_p11 }
 0x136   : > { %s348_s24 = scalar_lea.sflag [#allocation4], %s347_s11 }
 0x137   : > { %p453_p1 = pneg %p452_p0 }
 0x139   : > { %592 = dma.done.wait (%p453_p1), %s348_s24, 128  }
 0x13a   : > { %594 = vsyncadd (%p453_p1), %s348_s24, 4294967168  ;;  %s19_s17 = sadd.s32 1, %s617_s17   ;;  %s776_s12 = smov %s601_s13 }
 0x13b   : > { %p16_p2 = scmp.ge.s32.totalorder %s19_s17, 4   ;;  %s777_s13 = smov %s605_s14 }
 0x13c   : > { %s778_s14 = smov %s695_s26  ;;  %s779_s15 = smov %s613_s16 }
 0x13d   : > { %s780_s16 = smov %s782_s20  ;;  %18 = sbr.rel (!%p16_p2) target bundleno = 6 (0x6), region = 77 }
 0x142   :  { %354 = vsyncpa [#allocation3], 1 }
 0x143   :  { %356 = vsyncpa [#allocation3 + $0x1], 1 }
 0x144   :  { %357 = vsyncpa [#allocation4], 1 }
 0x145   :  { %359 = vsyncpa [#allocation4 + $0x1], 1 }

</bundles_post_ra>
